<compile_context>
chip_gen: v7x
topology: tpu7x:2x2x1
jax: 0.10.0
libtpu: 0.0.40
codegen_flags: <defaults>
</compile_context>

<pallas_src>
import jax
import jax.numpy as jnp
from jax.experimental import pallas as pl
from jax.experimental.pallas import tpu as pltpu


def latent_z_kernel(x_ref, w_ref, b_ref, eps_ref, out_ref):
    """x:(bm,H) bf16  w:(H,2L) bf16  b:(1,2L) f32  eps:(bm,L) f32
    out:(bm,3L) f32 laid out as [z | mu | logvar]."""
    L = eps_ref.shape[-1]

    # One fused MXU matmul: proj = [mu | logvar] along the lanes, f32 accum.
    proj = jnp.dot(x_ref[...], w_ref[...],
                   preferred_element_type=jnp.float32) + b_ref[...]
    mu = proj[:, :L]
    logvar = proj[:, L:]

    # Reparameterization, kept in f32 (EUP exp; v5e has no bf16 VPU/EUP).
    std = jnp.exp(0.5 * logvar)
    z = std * eps_ref[...] + mu

    # Two slice stores instead of a 3-way concatenate: reuse proj's lanes.
    out_ref[:, L:] = proj          # [mu | logvar]
    out_ref[:, :L] = z


def prepare_latent_z_params(w_mu, b_mu, w_logvar, b_logvar,
                            matmul_dtype=jnp.bfloat16):
    """One-time parameter prep (hoisted out of the per-call path).

    PyTorch nn.Linear weights are (L, H); transpose + concatenate along the
    output axis so the kernel does a single x @ W_fused matmul.  Weight is
    stored in the MXU input dtype (bf16); bias stays f32 (added post-matmul).
    NOTE: if L grows beyond toy sizes, pad L (hence 2L/3L) to a multiple of
    128 here so the lane splits / writeback stay lane-dense.
    """
    w_mu = jnp.asarray(w_mu, jnp.float32)
    w_logvar = jnp.asarray(w_logvar, jnp.float32)
    L = w_mu.shape[0]
    w_fused = jnp.concatenate([w_mu.T, w_logvar.T], axis=1).astype(matmul_dtype)
    b_fused = jnp.concatenate(
        [jnp.asarray(b_mu, jnp.float32), jnp.asarray(b_logvar, jnp.float32)]
    ).reshape(1, 2 * L)
    return w_fused, b_fused                                   # (H,2L), (1,2L)


def latent_z(p_x, w_fused, b_fused, eps, *, block_b=256):
    """p_x: (B, H) f32; w_fused: (H, 2L) bf16; b_fused: (1, 2L) f32;
    eps: (B, L) f32.  Returns (z, logvar, mu), each (B, L) f32."""
    B, H = p_x.shape
    L = eps.shape[-1]
    assert w_fused.shape == (H, 2 * L) and b_fused.shape == (1, 2 * L)

    # MXU input dtype (bf16 per prepare); elementwise path stays f32.
    x = p_x.astype(w_fused.dtype)

    # Batch grid: single block at toy sizes, 256-row blocks at real batch.
    bm = B if B <= block_b else block_b
    grid = (pl.cdiv(B, bm),)

    in_specs = [
        pl.BlockSpec((bm, H), lambda i: (i, 0)),          # x: streamed
        pl.BlockSpec((H, 2 * L), lambda i: (0, 0)),       # w: resident
        pl.BlockSpec((1, 2 * L), lambda i: (0, 0)),       # b: resident
        pl.BlockSpec((bm, L), lambda i: (i, 0)),          # eps: streamed
    ]
    out_specs = pl.BlockSpec((bm, 3 * L), lambda i: (i, 0))

    cost = pl.CostEstimate(
        flops=2 * B * H * (2 * L),
        transcendentals=B * L,
        bytes_accessed=(x.dtype.itemsize * B * H
                        + w_fused.dtype.itemsize * H * 2 * L
                        + 4 * 2 * L + 4 * B * L + 4 * B * 3 * L),
    )

    # VMEM budget: resident weight/bias + double-buffered streamed blocks.
    resident = H * 2 * L * w_fused.dtype.itemsize + 2 * L * 4
    streamed = bm * H * x.dtype.itemsize + bm * L * 4 + bm * 3 * L * 4
    vmem_est = resident + 2 * streamed
    vmem_limit = None
    if vmem_est > 32 * 1024 * 1024:
        # Cap at 64 MiB: v7x physical VMEM (v5e/v6e have 128 MiB).
        vmem_limit = min(int(vmem_est * 3 // 2), 64 * 1024 * 1024)

    compiler_params = pltpu.CompilerParams(
        dimension_semantics=("parallel",),   # v7x: shard batch over both TCs
        vmem_limit_bytes=vmem_limit,
    )

    slab = pl.pallas_call(
        latent_z_kernel,
        out_shape=jax.ShapeDtypeStruct((B, 3 * L), jnp.float32),
        grid=grid,
        in_specs=in_specs,
        out_specs=out_specs,
        compiler_params=compiler_params,
        cost_estimate=cost,
    )(x, w_fused, b_fused, eps)

    z = slab[:, :L]
    mu = slab[:, L:2 * L]
    logvar = slab[:, 2 * L:]
    return z, logvar, mu


if __name__ == "__main__":
    # Small shapes implied by the module: batch=8, hidden=32, latent=16.
    B, H, L = 8, 32, 16

    key = jax.random.PRNGKey(0)
    k_x, k_wmu, k_bmu, k_wlv, k_blv, k_eps = jax.random.split(key, 6)

    p_x = jax.random.normal(k_x, (B, H), dtype=jnp.float32)
    # Deterministic parameter init (uniform, PyTorch-Linear-like scale 1/sqrt(H)).
    bound = 1.0 / jnp.sqrt(jnp.float32(H))
    w_mu = jax.random.uniform(k_wmu, (L, H), jnp.float32, -bound, bound)
    b_mu = jax.random.uniform(k_bmu, (L,), jnp.float32, -bound, bound)
    w_logvar = jax.random.uniform(k_wlv, (L, H), jnp.float32, -bound, bound)
    b_logvar = jax.random.uniform(k_blv, (L,), jnp.float32, -bound, bound)
    # eps ~ N(0,1), same role as torch.randn_like(std).
    eps = jax.random.normal(k_eps, (B, L), dtype=jnp.float32)

    # One-time parameter prep (outside the per-call path).
    w_fused, b_fused = prepare_latent_z_params(w_mu, b_mu, w_logvar, b_logvar)
    w_fused, b_fused = jax.block_until_ready((w_fused, b_fused))

    z, logvar, mu = latent_z(p_x, w_fused, b_fused, eps)
    jax.block_until_ready((z, logvar, mu))

    # --- Reference 1: same bf16 quantization of MXU inputs, tight tolerance.
    hi = jax.lax.Precision.HIGHEST
    x_q = p_x.astype(jnp.bfloat16).astype(jnp.float32)
    w_mu_q = w_fused[:, :L].astype(jnp.float32)
    w_lv_q = w_fused[:, L:].astype(jnp.float32)
    mu_q = jnp.dot(x_q, w_mu_q, precision=hi) + b_mu
    lv_q = jnp.dot(x_q, w_lv_q, precision=hi) + b_logvar
    z_q = jnp.exp(0.5 * lv_q) * eps + mu_q
    assert jnp.allclose(mu, mu_q, atol=1e-4, rtol=1e-4)
    assert jnp.allclose(logvar, lv_q, atol=1e-4, rtol=1e-4)
    assert jnp.allclose(z, z_q, atol=1e-4, rtol=1e-4)

    # --- Reference 2: full-f32 module semantics, bf16-input tolerance.
    mu_ref = jnp.dot(p_x, w_mu.T, precision=hi) + b_mu
    lv_ref = jnp.dot(p_x, w_logvar.T, precision=hi) + b_logvar
    z_ref = jnp.exp(0.5 * lv_ref) * eps + mu_ref
    assert jnp.allclose(mu, mu_ref, atol=5e-2, rtol=5e-2)
    assert jnp.allclose(logvar, lv_ref, atol=5e-2, rtol=5e-2)
    assert jnp.allclose(z, z_ref, atol=5e-2, rtol=5e-2)

    print("KERNEL_OK")
</pallas_src>

<mosaic_0001>
module attributes {stable_mosaic.version = 11 : i64} {
  func.func @latent_z_kernel(%arg0: i32, %arg1: memref<8x32xbf16, #tpu.memory_space<vmem>>, %arg2: memref<32x32xbf16, #tpu.memory_space<vmem>>, %arg3: memref<1x32xf32, #tpu.memory_space<vmem>>, %arg4: memref<8x16xf32, #tpu.memory_space<vmem>>, %arg5: memref<8x48xf32, #tpu.memory_space<vmem>>) attributes {dimension_semantics = [#tpu.dimension_semantics<parallel>], iteration_bounds = array<i64: 1>, scalar_prefetch = 0 : i64, scratch_operands = 0 : i64, tpu.core_type = #tpu.core_type<tc>, window_params = [{transform_indices = @transform_0, window_bounds = array<i64: 8, 32>}, {pipeline_mode = #tpu.pipeline_mode<synchronous>, transform_indices = @transform_1, window_bounds = array<i64: 32, 32>}, {pipeline_mode = #tpu.pipeline_mode<synchronous>, transform_indices = @transform_2, window_bounds = array<i64: 1, 32>}, {transform_indices = @transform_3, window_bounds = array<i64: 8, 16>}, {transform_indices = @transform_4, window_bounds = array<i64: 8, 48>}]} {
    %c0 = arith.constant 0 : index
    %c0_0 = arith.constant 0 : index
    %0 = vector.load %arg1[%c0, %c0_0] : memref<8x32xbf16, #tpu.memory_space<vmem>>, vector<8x32xbf16>
    %c0_1 = arith.constant 0 : index
    %c0_2 = arith.constant 0 : index
    %1 = vector.load %arg2[%c0_1, %c0_2] : memref<32x32xbf16, #tpu.memory_space<vmem>>, vector<32x32xbf16>
    %cst = arith.constant dense<0.000000e+00> : vector<8x32xf32>
    %2 = tpu.matmul %0, %1, %cst {dimension_numbers = #tpu.dot_dimension_numbers<[1], [0], [0], [1], [0, 0, 1, 1], [], []>} : vector<8x32xbf16>, vector<32x32xbf16>, vector<8x32xf32> -> vector<8x32xf32>
    %c0_3 = arith.constant 0 : index
    %c0_4 = arith.constant 0 : index
    %3 = vector.load %arg3[%c0_3, %c0_4] : memref<1x32xf32, #tpu.memory_space<vmem>>, vector<1x32xf32>
    %4 = vector.broadcast %3 : vector<1x32xf32> to vector<8x32xf32>
    %5 = arith.addf %2, %4 : vector<8x32xf32>
    %6 = vector.extract_strided_slice %5 {offsets = [0, 0], sizes = [8, 16], strides = [1, 1]} : vector<8x32xf32> to vector<8x16xf32>
    %7 = vector.extract_strided_slice %5 {offsets = [0, 16], sizes = [8, 16], strides = [1, 1]} : vector<8x32xf32> to vector<8x16xf32>
    %cst_5 = arith.constant 5.000000e-01 : f32
    %8 = vector.broadcast %cst_5 : f32 to vector<8x16xf32>
    %9 = arith.mulf %8, %7 : vector<8x16xf32>
    %10 = math.exp %9 : vector<8x16xf32>
    %c0_6 = arith.constant 0 : index
    %c0_7 = arith.constant 0 : index
    %11 = vector.load %arg4[%c0_6, %c0_7] : memref<8x16xf32, #tpu.memory_space<vmem>>, vector<8x16xf32>
    %12 = arith.mulf %10, %11 : vector<8x16xf32>
    %13 = arith.addf %12, %6 : vector<8x16xf32>
    %c0_8 = arith.constant 0 : index
    %c16 = arith.constant 16 : index
    %14 = vector.load %arg5[%c0_8, %c16] : memref<8x48xf32, #tpu.memory_space<vmem>>, vector<8x32xf32>
    tpu.vector_store %arg5[%c0_8, %c16], %5 {strides = array<i32>} : memref<8x48xf32, #tpu.memory_space<vmem>>, vector<8x32xf32>,
    %c0_9 = arith.constant 0 : index
    %c0_10 = arith.constant 0 : index
    %15 = vector.load %arg5[%c0_9, %c0_10] : memref<8x48xf32, #tpu.memory_space<vmem>>, vector<8x16xf32>
    tpu.vector_store %arg5[%c0_9, %c0_10], %13 {strides = array<i32>} : memref<8x48xf32, #tpu.memory_space<vmem>>, vector<8x16xf32>,
    return
  }
  func.func @transform_0(%arg0: i32) -> (i32, i32) {
    %c0_i32 = arith.constant 0 : i32
    %c0_i32_0 = arith.constant 0 : i32
    return %arg0, %c0_i32 : i32, i32
  }
  func.func @transform_1(%arg0: i32) -> (i32, i32) {
    %c0_i32 = arith.constant 0 : i32
    %c0_i32_0 = arith.constant 0 : i32
    %c0_i32_1 = arith.constant 0 : i32
    return %c0_i32, %c0_i32_0 : i32, i32
  }
  func.func @transform_2(%arg0: i32) -> (i32, i32) {
    %c0_i32 = arith.constant 0 : i32
    %c0_i32_0 = arith.constant 0 : i32
    %c0_i32_1 = arith.constant 0 : i32
    return %c0_i32, %c0_i32_0 : i32, i32
  }
  func.func @transform_3(%arg0: i32) -> (i32, i32) {
    %c0_i32 = arith.constant 0 : i32
    %c0_i32_0 = arith.constant 0 : i32
    return %arg0, %c0_i32 : i32, i32
  }
  func.func @transform_4(%arg0: i32) -> (i32, i32) {
    %c0_i32 = arith.constant 0 : i32
    %c0_i32_0 = arith.constant 0 : i32
    return %arg0, %c0_i32 : i32, i32
  }
}

</mosaic_0001>

<bundles_post_ra>
// kernel: tpu_custom_call.1
= control target key start
LH: loop header
LB: loop body
LE: loop exit
PB: predicated region body
PF: predicated region fallthrough
CT: control target
= control target key end

     0   :  { %9 = vsyncpa [#allocation3], 0  ;;  %s334_s0 = inlined_call_operand.hbm [shape: bf16[8,32], index: 0, kind: input, shape index: {}]   ;;  %s335_s1 = inlined_call_operand.hbm [shape: bf16[32,32], index: 1, kind: input, shape index: {}]   ;;  %s336_s2 = inlined_call_operand.vmem [shape: f32[1,32], index: 2, kind: input, shape index: {}]   ;;  %s337_s3 = inlined_call_operand.vmem [shape: f32[8,16], index: 3, kind: input, shape index: {}]   ;;  %s338_s4 = inlined_call_operand.hbm [shape: f32[8,48], index: 4, kind: output, shape index: {}]  }
   0x1   :  { %10 = vsyncpa [#allocation6], 0 }
   0x2   :  { %11 = vsyncpa [#allocation4], 0  ;;  %s251_s15 = smov [#allocation2]   ;;  %s252_s17 = smov [#allocation5]  }
   0x3   :  { %s18_s16 = sshll.u32 %s251_s15, 4  ;;  %s27_s18 = sshll.u32 %s252_s17, 4  ;;  %s19_s16 = int_to_ptr.vmem [resolvable:$true] %s18_s16  ;;  %s285_s18 = int_to_ptr.vmem [resolvable:$true] %s27_s18 }
   0x4   :  { %s179_s21 = scalar_lea.hbm %s334_s0, 64 }
   0x5   :  { %p180_p0 = scmp.ne.s32.totalorder %s334_s0, %s179_s21  ;;  %p183_p1 = scmp.lt.u32.totalorder %s179_s21, %s334_s0 }
   0x7   :  { %p185_p2 = pnand %p183_p1, %p180_p0 }
   0x9   :  { %188 = shalt.err (!%p185_p2)
}
   0xa   :  { %s189_s26 = scalar_lea.vmem %s19_s16, 64  ;;  %p194_p4 = scmp.lt.s32.totalorder %s19_s16, %s19_s16 }
   0xb   :  { %p190_p3 = scmp.ne.s32.totalorder %s19_s16, %s189_s26  ;;  %p195_p5 = scmp.lt.s32.totalorder %s189_s26, %s189_s26 }
   0xd   :  { %p196_p6 = por %p195_p5, %p194_p4 }
   0xf   :  { %p197_p7 = pnand %p196_p6, %p190_p3 }
  0x11   :  { %200 = shalt.err (!%p197_p7)
}
  0x12   :  { %21 = dma.hbm_to_vmem [thread:$0]  %s334_s0, 64, %s19_s16, [#allocation3]  }
  0x13   :  { %s201_s5 = scalar_lea.hbm %s335_s1, 256 }
  0x14   :  { %p202_p8 = scmp.ne.s32.totalorder %s335_s1, %s201_s5  ;;  %p205_p9 = scmp.lt.u32.totalorder %s201_s5, %s335_s1 }
  0x16   :  { %p207_p10 = pnand %p205_p9, %p202_p8 }
  0x18   :  { %210 = shalt.err (!%p207_p10)
}
  0x19   :  { %s211_s10 = scalar_lea.vmem %s285_s18, 256  ;;  %p216_p12 = scmp.lt.s32.totalorder %s285_s18, %s285_s18 }
  0x1a   :  { %p212_p11 = scmp.ne.s32.totalorder %s285_s18, %s211_s10  ;;  %p217_p13 = scmp.lt.s32.totalorder %s211_s10, %s211_s10 }
  0x1c   :  { %p218_p0 = por %p217_p13, %p216_p12 }
  0x1e   :  { %p219_p1 = pnand %p218_p0, %p212_p11 }
  0x20   :  { %222 = shalt.err (!%p219_p1)
}
  0x21   :  { %s253_s0 = smov 64   ;;  %s254_s11 = smov 4  }
  0x22   :  { %33 = dma.hbm_to_vmem [thread:$0]  %s335_s1, 256, %s285_s18, [#allocation6], %s253_s0, %s253_s0, %s254_s11  }
  0x23   :  { %245 = dma.done.wait [#allocation3], 64  }
  0x24   :  { %246 = vsyncadd [#allocation3], 4294967232 }
  0x25   :  { %247 = dma.done.wait [#allocation6], 256  }
  0x26   :  { %248 = vsyncadd [#allocation6], 4294967040  ;;  %v255_v0 = vmov 0.0   ;;  %vm256_vm0 = vmmov 0   ;;  %v175_v1 = vld [vmem:[#allocation5] sm:$0xff]   ;;  %v176_v2 = vld [vmem:[#allocation5 + $0x8] sm:$0xff]  }
  0x27   :  { %158 = vmatprep.subr.bf16.mxu0 %v255_v0  ;;  %162 = vmatprep.mubr.msk.bf16.mxu0 %vm256_vm0, %v255_v0  ;;  %v116_v3 = vld [vmem:[%s337_s3] sm:$0xff]  ;;  %s257_s16 = smov 16   ;;  %v45_v4 = vld [vmem:[#allocation2] sm:$0xf]  ;;  %vm69_vm1 = vcmask 261120   ;;  %vm127_vm2 = vcmask 392320  }
  0x28   :  { %159 = vmatpush3.bf16.msra.mxu0 %v175_v1  ;;  %118 = vrot.lane.b32.xlu0 %v116_v3, %s257_s16  ;;  %v151_v5 = vld [vmem:[%s336_s2] ss:$0 sm:$0xff]  ;;  %s258_s3 = smov 112   ;;  %s259_s18 = smov [#allocation7]   ;;  %vm133_vm3 = vcmask 130048  }
  0x29   :  { %160 = vmatprep.subr.bf16.mxu0 %v255_v0  ;;  %s141_s2 = sshll.u32 %s259_s18, 4  ;;  %s142_s2 = int_to_ptr.vmem [resolvable:$true] %s141_s2 }
  0x2a   :  { %s223_s19 = scalar_lea.vmem %s142_s2, 128  ;;  %p228_p3 = scmp.lt.s32.totalorder %s142_s2, %s142_s2 }
  0x2b   :  { %p224_p2 = scmp.ne.s32.totalorder %s142_s2, %s223_s19  ;;  %p229_p4 = scmp.lt.s32.totalorder %s223_s19, %s223_s19 }
  0x2c   :  { %161 = vmatpush3.bf16.msra.mxu0 %v176_v2 }
  0x2d   :  { %p230_p5 = por %p229_p4, %p228_p3 }
  0x2f   :  { %163 = vmatmul.mubr.msk.bf16.vlgmr.msra.gmra.mrb[0].mxu0 %vm69_vm1, %v45_v4  ;;  %p231_p6 = pnand %p230_p5, %p224_p2 }
  0x9a   :  { %v119_v14 = vpop.permute.xlu0 %118 }
 0x102   :  { %v107_v6 = vpop.f32.mrb[0].mxu0 }
 0x103   :  { %v108_v7 = vadd.f32 %v151_v5, %v107_v6  ;;  %v164_v8 = vpop.f32.mrb[1].mxu0 }
 0x104   :  { %v110_v9 = vpop.f32.mrb[2].mxu0 }
 0x105   :  { %123 = vrot.lane.b32.xlu0 %v108_v7, %s257_s16  ;;  %v165_v10 = vpop.f32.mrb[3].mxu0  ;;  %v113_v11 = vmul.f32 0.5, %v108_v7 }
 0x107   :  { %v114_v12 = vmul.f32 1.442695, %v113_v11 }
 0x109   :  { %177 = vpow2.f32 %v114_v12 }
 0x113   :  { %v178_v13 = vpop.eup %177 }
 0x114   :  { %v121_v15 = vmul.f32 %v178_v13, %v119_v14 }
 0x177   :  { %v124_v16 = vpop.permute.xlu0 %123 }
 0x178   :  { %v126_v17 = vadd.f32 %v124_v16, %v121_v15  ;;  %128 = vst.msk [vmem:[#allocation7] sm:$0xff] %vm127_vm2, %v124_v16 }
 0x17a   :  { %130 = vrot.lane.b32.xlu1 %v126_v17, %s258_s3 }
 0x1ec   :  { %v131_v18 = vpop.permute.xlu1 %130 }
 0x1ed   :  { %134 = vst.msk [vmem:[#allocation7] sm:$0xff] %vm133_vm3, %v131_v18 }
 0x1ee   :  { %234 = shalt.err (!%p231_p6)
}
 0x1ef   :  { %s235_s22 = scalar_lea.hbm %s338_s4, 128 }
 0x1f0   :  { %p236_p7 = scmp.ne.s32.totalorder %s338_s4, %s235_s22  ;;  %p239_p8 = scmp.lt.u32.totalorder %s235_s22, %s338_s4 }
 0x1f2   :  { %p241_p9 = pnand %p239_p8, %p236_p7 }
 0x1f4   :  { %244 = shalt.err (!%p241_p9)
}
 0x1f5   :  { %144 = dma.vmem_to_hbm [thread:$0]  %s142_s2, 128, %s338_s4, [#allocation4]  }
 0x1f6   :  { %249 = dma.done.wait [#allocation4], 128  }
 0x1f7   :  { %250 = vsyncadd [#allocation4], 4294967168 }
 0x1f8   :  { %148 = vsyncpa [#allocation3], 1 }
 0x1f9   :  { %149 = vsyncpa [#allocation6], 1 }
 0x1fa   :  { %150 = vsyncpa [#allocation4], 1 }

</bundles_post_ra>
